<compile_context>
chip_gen: v7x
topology: tpu7x:2x2x1
jax: 0.10.0
libtpu: 0.0.40
codegen_flags: <defaults>
</compile_context>

<pallas_src>
import functools

import jax
import jax.numpy as jnp
from jax.experimental import pallas as pl
from jax.experimental.pallas import tpu as pltpu

_MIB = 1024 * 1024


def _iou_partial_kernel(y_pred_ref, y_true_ref, inter_ref, total_ref,
                        inter_acc, total_acc, *,
                        spatial_size, tile, tiles_per_chunk, n_tiles):
    """One grid step: accumulate per-(b,c) partial sums for one spatial tile.

    y_pred_ref / y_true_ref : (B*C, T) VMEM tiles.
    inter_ref / total_ref   : (1, B*C, 1) per-chunk output blocks (written once).
    inter_acc / total_acc   : (B*C, 1) f32 VMEM scratch accumulators.
    """
    p = pl.program_id(0)
    k = pl.program_id(1)

    @pl.when(k == 0)
    def _init():
        inter_acc[...] = jnp.zeros_like(inter_acc)
        total_acc[...] = jnp.zeros_like(total_acc)

    yp = y_pred_ref[...].astype(jnp.float32)
    yt = y_true_ref[...].astype(jnp.float32)

    def _accumulate(yp_v, yt_v):
        # Intersection and plain sum kept as separate partials; union is formed
        # once in the wrapper (total - inter).  Single lane-axis reduce each.
        inter_acc[...] += jnp.sum(yt_v * yp_v, axis=-1, keepdims=True)
        total_acc[...] += jnp.sum(yt_v + yp_v, axis=-1, keepdims=True)

    if spatial_size % tile == 0:
        _accumulate(yp, yt)
    else:
        # Only the globally-last tile can be ragged (P*K == ceil(S/T) invariant).
        is_last = (p * tiles_per_chunk + k) == (n_tiles - 1)

        @pl.when(jnp.logical_not(is_last))
        def _fast():
            _accumulate(yp, yt)

        @pl.when(is_last)
        def _ragged():
            valid_lanes = spatial_size - (n_tiles - 1) * tile
            lane = jax.lax.broadcasted_iota(jnp.int32, yp.shape, dimension=1)
            m = lane < valid_lanes
            _accumulate(jnp.where(m, yp, 0.0), jnp.where(m, yt, 0.0))

    @pl.when(k == tiles_per_chunk - 1)
    def _finalize():
        inter_ref[0] = inter_acc[...]
        total_ref[0] = total_acc[...]


def _padded_block_bytes(rows, lanes, dtype):
    """VMEM footprint of a (rows, lanes) block, including sublane/lane padding."""
    isz = jnp.dtype(dtype).itemsize
    sub = 8 * max(1, 4 // isz)                      # f32: 8, bf16: 16, int8: 32
    rows_p = -(-rows // sub) * sub
    lanes_p = -(-lanes // 128) * 128
    return rows_p * lanes_p * isz


def _num_tensorcores():
    """Best-effort TensorCore count; defaults to 1 (safe on v5e/v6e)."""
    try:
        info = pltpu.get_tpu_info()
        for name in ("num_cores", "core_count", "num_tensorcores",
                     "tensorcores_per_chip", "cores_per_chip"):
            v = getattr(info, name, None)
            if isinstance(v, int) and v >= 1:
                return v
    except Exception:
        pass
    try:
        v = getattr(jax.devices()[0], "num_cores", None)
        if isinstance(v, int) and v >= 1:
            return v
    except Exception:
        pass
    return 1


def _plan(rows, S, pred_dtype, true_dtype, num_cores):
    """Pick (T, P, K, vmem_limit) with P*K == ceil(S/T) and T a multiple of 128
    whenever T < S.  Budget accounts for real (padded) VMEM block footprints."""
    # Generation-aware budgets: v7x (64 MiB VMEM, fastest HBM) gets ~11 MiB per
    # buffer; 128-MiB parts (v5e/v6e) can go bigger.  Defaults are v7x-safe.
    input_budget = 44 * _MIB          # 2 inputs x 2 pipeline buffers combined
    vmem_cap = 56 * _MIB
    try:
        if pltpu.get_tpu_info().vmem_capacity_bytes >= 100 * _MIB:
            input_budget = 88 * _MIB
            vmem_cap = 100 * _MIB
    except Exception:
        pass

    def buffered_bytes(t):
        return 2 * (_padded_block_bytes(rows, t, pred_dtype) +
                    _padded_block_bytes(rows, t, true_dtype))

    # Largest lane tile (multiple of 128) fitting the double-buffered budget.
    t_cap = 128
    while buffered_bytes(t_cap + 128) <= input_budget:
        t_cap += 128

    if S <= t_cap:
        T, P, K = S, 1, 1
    else:
        T = t_cap
        n_tiles = -(-S // T)
        P = 1
        if num_cores > 1 and n_tiles >= num_cores:
            # Find a T (shrinking in 128-steps) whose tile count splits evenly
            # across cores; otherwise stay single-chunk.
            for cand in range(t_cap, max(127, t_cap - 8 * 128), -128):
                n = -(-S // cand)
                if n % num_cores == 0:
                    T, n_tiles, P = cand, n, num_cores
                    break
        K = n_tiles // P

    vmem_limit = min(vmem_cap, max(32 * _MIB, buffered_bytes(T) + 8 * _MIB))
    return T, P, K, vmem_limit


def iou_classes_loss(y_pred, y_true, smooth=0.001):
    """Pallas equivalent of IoUClassesLoss.forward(y_pred, y_true) (NCHW)."""
    assert y_pred.shape == y_true.shape
    B, C, H, W = y_pred.shape
    S = H * W
    R = B * C

    # Free reshapes -> sublane-dense rows, lane-dense spatial axis.  Keep input
    # dtype (bf16 inputs halve HBM bytes); cast to f32 after load in-kernel.
    yp2 = y_pred.reshape(R, S)
    yt2 = y_true.reshape(R, S)

    num_cores = _num_tensorcores()
    T, P, K, vmem_limit = _plan(R, S, y_pred.dtype, y_true.dtype, num_cores)
    n_tiles = P * K

    kernel = functools.partial(
        _iou_partial_kernel,
        spatial_size=S, tile=T, tiles_per_chunk=K, n_tiles=n_tiles)

    in_spec = pl.BlockSpec((R, T), lambda p, k: (0, p * K + k))
    out_spec = pl.BlockSpec((1, R, 1), lambda p, k: (p, 0, 0))

    if P > 1:
        dim_sem = (pltpu.CORE_PARALLEL, pltpu.ARBITRARY)  # split chunks across TCs
    else:
        dim_sem = ("arbitrary", "arbitrary")

    itemsize = max(jnp.dtype(y_pred.dtype).itemsize,
                   jnp.dtype(y_true.dtype).itemsize)

    inter_p, total_p = pl.pallas_call(
        kernel,
        out_shape=(jax.ShapeDtypeStruct((P, R, 1), jnp.float32),
                   jax.ShapeDtypeStruct((P, R, 1), jnp.float32)),
        grid=(P, K),
        in_specs=[in_spec, in_spec],
        out_specs=(out_spec, out_spec),
        scratch_shapes=[pltpu.VMEM((R, 1), jnp.float32),
                        pltpu.VMEM((R, 1), jnp.float32)],
        compiler_params=pltpu.CompilerParams(
            dimension_semantics=dim_sem,
            vmem_limit_bytes=vmem_limit),
        cost_estimate=pl.CostEstimate(
            flops=3 * R * S,
            transcendentals=0,
            bytes_accessed=2 * R * S * itemsize),
    )(yp2, yt2)

    # Tiny epilogue in plain JAX: fold chunk + batch, per-class IoU, 1 - mean.
    inter = jnp.sum(inter_p, axis=(0, 2)).reshape(B, C).sum(axis=0)   # (C,)
    total = jnp.sum(total_p, axis=(0, 2)).reshape(B, C).sum(axis=0)   # (C,)
    union = total - inter
    iou_c = (inter + smooth) / (union + smooth)
    return 1.0 - jnp.sum(iou_c) / C


def _reference_loss(y_pred, y_true, smooth=0.001):
    """Pure-JAX reference matching the PyTorch module semantics."""
    yt = y_true.astype(jnp.float32)
    yp = y_pred.astype(jnp.float32)
    inter = jnp.sum(yt * yp, axis=(0, 2, 3))
    union = jnp.sum(yt + yp, axis=(0, 2, 3)) - inter
    iou_c = (inter + smooth) / (union + smooth)
    return 1.0 - jnp.mean(iou_c)


if __name__ == "__main__":
    B, C, H, W = 2, 4, 16, 16  # nb_classes = 4
    key = jax.random.PRNGKey(0)
    k_pred, k_true = jax.random.split(key)

    # y_pred: soft predictions in [0, 1]; y_true: binary per-class masks.
    y_pred = jax.nn.sigmoid(jax.random.normal(k_pred, (B, C, H, W), jnp.float32))
    y_true = (jax.random.uniform(k_true, (B, C, H, W)) > 0.5).astype(jnp.float32)

    loss = jax.block_until_ready(iou_classes_loss(y_pred, y_true))
    ref = jax.block_until_ready(_reference_loss(y_pred, y_true))

    assert jnp.allclose(loss, ref, atol=1e-5, rtol=1e-5), (loss, ref)
    print("KERNEL_OK")
</pallas_src>

<mosaic_0001>
module attributes {stable_mosaic.version = 11 : i64} {
  func.func @_iou_partial_kernel(%arg0: i32, %arg1: i32, %arg2: memref<8x256xf32, #tpu.memory_space<vmem>>, %arg3: memref<8x256xf32, #tpu.memory_space<vmem>>, %arg4: memref<1x8x1xf32, #tpu.memory_space<vmem>>, %arg5: memref<1x8x1xf32, #tpu.memory_space<vmem>>, %arg6: memref<8x1xf32, #tpu.memory_space<vmem>>, %arg7: memref<8x1xf32, #tpu.memory_space<vmem>>) attributes {dimension_semantics = [#tpu.dimension_semantics<arbitrary>, #tpu.dimension_semantics<arbitrary>], iteration_bounds = array<i64: 1, 1>, scalar_prefetch = 0 : i64, scratch_operands = 2 : i64, tpu.core_type = #tpu.core_type<tc>, window_params = [{transform_indices = @transform_0, window_bounds = array<i64: 8, 256>}, {transform_indices = @transform_1, window_bounds = array<i64: 8, 256>}, {transform_indices = @transform_2, window_bounds = array<i64: 1, 8, 1>}, {transform_indices = @transform_3, window_bounds = array<i64: 1, 8, 1>}]} {
    %c0_i32 = arith.constant 0 : i32
    %0 = arith.cmpi eq, %arg1, %c0_i32 : i32
    %1 = arith.extui %0 : i1 to i32
    %c0_i32_0 = arith.constant 0 : i32
    %2 = arith.cmpi ne, %1, %c0_i32_0 : i32
    scf.if %2 {
      %cst_15 = arith.constant 0.000000e+00 : f32
      %20 = vector.broadcast %cst_15 : f32 to vector<8x1xf32>
      %c0_16 = arith.constant 0 : index
      %c0_17 = arith.constant 0 : index
      %21 = vector.load %arg6[%c0_16, %c0_17] : memref<8x1xf32, #tpu.memory_space<vmem>>, vector<8x1xf32>
      tpu.vector_store %arg6[%c0_16, %c0_17], %20 {strides = array<i32>} : memref<8x1xf32, #tpu.memory_space<vmem>>, vector<8x1xf32>,
      %cst_18 = arith.constant 0.000000e+00 : f32
      %22 = vector.broadcast %cst_18 : f32 to vector<8x1xf32>
      %c0_19 = arith.constant 0 : index
      %c0_20 = arith.constant 0 : index
      %23 = vector.load %arg7[%c0_19, %c0_20] : memref<8x1xf32, #tpu.memory_space<vmem>>, vector<8x1xf32>
      tpu.vector_store %arg7[%c0_19, %c0_20], %22 {strides = array<i32>} : memref<8x1xf32, #tpu.memory_space<vmem>>, vector<8x1xf32>,
    } else {
    }
    %c0 = arith.constant 0 : index
    %c0_1 = arith.constant 0 : index
    %3 = vector.load %arg2[%c0, %c0_1] : memref<8x256xf32, #tpu.memory_space<vmem>>, vector<8x256xf32>
    %c0_2 = arith.constant 0 : index
    %c0_3 = arith.constant 0 : index
    %4 = vector.load %arg3[%c0_2, %c0_3] : memref<8x256xf32, #tpu.memory_space<vmem>>, vector<8x256xf32>
    %c0_4 = arith.constant 0 : index
    %c0_5 = arith.constant 0 : index
    %5 = vector.load %arg6[%c0_4, %c0_5] : memref<8x1xf32, #tpu.memory_space<vmem>>, vector<8x1xf32>
    %6 = arith.mulf %4, %3 : vector<8x256xf32>
    %cst = arith.constant dense<0.000000e+00> : vector<8xf32>
    %7 = vector.multi_reduction <add>, %6, %cst [1] : vector<8x256xf32> to vector<8xf32>
    %8 = vector.shape_cast %7 : vector<8xf32> to vector<8x1xf32>
    %9 = arith.addf %5, %8 : vector<8x1xf32>
    %c0_6 = arith.constant 0 : index
    %c0_7 = arith.constant 0 : index
    %10 = vector.load %arg6[%c0_6, %c0_7] : memref<8x1xf32, #tpu.memory_space<vmem>>, vector<8x1xf32>
    tpu.vector_store %arg6[%c0_6, %c0_7], %9 {strides = array<i32>} : memref<8x1xf32, #tpu.memory_space<vmem>>, vector<8x1xf32>,
    %c0_8 = arith.constant 0 : index
    %c0_9 = arith.constant 0 : index
    %11 = vector.load %arg7[%c0_8, %c0_9] : memref<8x1xf32, #tpu.memory_space<vmem>>, vector<8x1xf32>
    %12 = arith.addf %4, %3 : vector<8x256xf32>
    %cst_10 = arith.constant dense<0.000000e+00> : vector<8xf32>
    %13 = vector.multi_reduction <add>, %12, %cst_10 [1] : vector<8x256xf32> to vector<8xf32>
    %14 = vector.shape_cast %13 : vector<8xf32> to vector<8x1xf32>
    %15 = arith.addf %11, %14 : vector<8x1xf32>
    %c0_11 = arith.constant 0 : index
    %c0_12 = arith.constant 0 : index
    %16 = vector.load %arg7[%c0_11, %c0_12] : memref<8x1xf32, #tpu.memory_space<vmem>>, vector<8x1xf32>
    tpu.vector_store %arg7[%c0_11, %c0_12], %15 {strides = array<i32>} : memref<8x1xf32, #tpu.memory_space<vmem>>, vector<8x1xf32>,
    %c0_i32_13 = arith.constant 0 : i32
    %17 = arith.cmpi eq, %arg1, %c0_i32_13 : i32
    %18 = arith.extui %17 : i1 to i32
    %c0_i32_14 = arith.constant 0 : i32
    %19 = arith.cmpi ne, %18, %c0_i32_14 : i32
    scf.if %19 {
      %c0_15 = arith.constant 0 : index
      %c0_16 = arith.constant 0 : index
      %20 = vector.load %arg6[%c0_15, %c0_16] : memref<8x1xf32, #tpu.memory_space<vmem>>, vector<8x1xf32>
      %c0_17 = arith.constant 0 : index
      %c0_18 = arith.constant 0 : index
      %c0_19 = arith.constant 0 : index
      %21 = vector.load %arg4[%c0_17, %c0_18, %c0_19] : memref<1x8x1xf32, #tpu.memory_space<vmem>>, vector<1x8x1xf32>
      %22 = vector.shape_cast %21 : vector<1x8x1xf32> to vector<8x1xf32>
      %23 = vector.shape_cast %20 : vector<8x1xf32> to vector<1x8x1xf32>
      tpu.vector_store %arg4[%c0_17, %c0_18, %c0_19], %23 {strides = array<i32>} : memref<1x8x1xf32, #tpu.memory_space<vmem>>, vector<1x8x1xf32>,
      %c0_20 = arith.constant 0 : index
      %c0_21 = arith.constant 0 : index
      %24 = vector.load %arg7[%c0_20, %c0_21] : memref<8x1xf32, #tpu.memory_space<vmem>>, vector<8x1xf32>
      %c0_22 = arith.constant 0 : index
      %c0_23 = arith.constant 0 : index
      %c0_24 = arith.constant 0 : index
      %25 = vector.load %arg5[%c0_22, %c0_23, %c0_24] : memref<1x8x1xf32, #tpu.memory_space<vmem>>, vector<1x8x1xf32>
      %26 = vector.shape_cast %25 : vector<1x8x1xf32> to vector<8x1xf32>
      %27 = vector.shape_cast %24 : vector<8x1xf32> to vector<1x8x1xf32>
      tpu.vector_store %arg5[%c0_22, %c0_23, %c0_24], %27 {strides = array<i32>} : memref<1x8x1xf32, #tpu.memory_space<vmem>>, vector<1x8x1xf32>,
    } else {
    }
    return
  }
  func.func @transform_0(%arg0: i32, %arg1: i32) -> (i32, i32) {
    %c1_i32 = arith.constant 1 : i32
    %0 = arith.muli %arg0, %c1_i32 : i32
    %1 = arith.addi %0, %arg1 : i32
    %c0_i32 = arith.constant 0 : i32
    %c0_i32_0 = arith.constant 0 : i32
    return %c0_i32, %1 : i32, i32
  }
  func.func @transform_1(%arg0: i32, %arg1: i32) -> (i32, i32) {
    %c1_i32 = arith.constant 1 : i32
    %0 = arith.muli %arg0, %c1_i32 : i32
    %1 = arith.addi %0, %arg1 : i32
    %c0_i32 = arith.constant 0 : i32
    %c0_i32_0 = arith.constant 0 : i32
    return %c0_i32, %1 : i32, i32
  }
  func.func @transform_2(%arg0: i32, %arg1: i32) -> (i32, i32, i32) {
    %c0_i32 = arith.constant 0 : i32
    %c0_i32_0 = arith.constant 0 : i32
    %c0_i32_1 = arith.constant 0 : i32
    return %arg0, %c0_i32, %c0_i32_0 : i32, i32, i32
  }
  func.func @transform_3(%arg0: i32, %arg1: i32) -> (i32, i32, i32) {
    %c0_i32 = arith.constant 0 : i32
    %c0_i32_0 = arith.constant 0 : i32
    %c0_i32_1 = arith.constant 0 : i32
    return %arg0, %c0_i32, %c0_i32_0 : i32, i32, i32
  }
}

</mosaic_0001>

<bundles_post_ra>
// kernel: tpu_custom_call.1
= control target key start
LH: loop header
LB: loop body
LE: loop exit
PB: predicated region body
PF: predicated region fallthrough
CT: control target
= control target key end

     0   :  { %9 = vsyncpa [#allocation5], 0  ;;  %s204_s0 = inlined_call_operand.hbm [shape: f32[8,256], index: 0, kind: input, shape index: {}]   ;;  %s205_s1 = inlined_call_operand.hbm [shape: f32[8,256], index: 1, kind: input, shape index: {}]   ;;  %s206_s2 = inlined_call_operand.vmem [shape: f32[1,8,1], index: 2, kind: output, shape index: {0}]   ;;  %s207_s3 = inlined_call_operand.vmem [shape: f32[1,8,1], index: 3, kind: output, shape index: {1}]  }
   0x1   :  { %10 = vsyncpa [#allocation7], 0  ;;  %s145_s12 = smov [#allocation4]   ;;  %s146_s14 = smov [#allocation6]  }
   0x2   :  { %s21_s13 = sshll.u32 %s145_s12, 4  ;;  %s35_s15 = sshll.u32 %s146_s14, 4  ;;  %s22_s13 = int_to_ptr.vmem [resolvable:$true] %s21_s13  ;;  %s36_s15 = int_to_ptr.vmem [resolvable:$true] %s35_s15 }
   0x3   :  { %s97_s18 = scalar_lea.hbm %s204_s0, 256 }
   0x4   :  { %p98_p0 = scmp.ne.s32.totalorder %s204_s0, %s97_s18  ;;  %p101_p1 = scmp.lt.u32.totalorder %s97_s18, %s204_s0 }
   0x6   :  { %p103_p2 = pnand %p101_p1, %p98_p0 }
   0x8   :  { %106 = shalt.err (!%p103_p2)
}
   0x9   :  { %s107_s23 = scalar_lea.vmem %s22_s13, 256  ;;  %p112_p4 = scmp.lt.s32.totalorder %s22_s13, %s22_s13 }
   0xa   :  { %p108_p3 = scmp.ne.s32.totalorder %s22_s13, %s107_s23  ;;  %p113_p5 = scmp.lt.s32.totalorder %s107_s23, %s107_s23 }
   0xc   :  { %p114_p6 = por %p113_p5, %p112_p4 }
   0xe   :  { %p115_p7 = pnand %p114_p6, %p108_p3 }
  0x10   :  { %118 = shalt.err (!%p115_p7)
}
  0x11   :  { %24 = dma.hbm_to_vmem [thread:$0]  %s204_s0, 256, %s22_s13, [#allocation5]  }
  0x12   :  { %s119_s28 = scalar_lea.hbm %s205_s1, 256 }
  0x13   :  { %p120_p8 = scmp.ne.s32.totalorder %s205_s1, %s119_s28  ;;  %p123_p9 = scmp.lt.u32.totalorder %s119_s28, %s205_s1 }
  0x15   :  { %p125_p10 = pnand %p123_p9, %p120_p8 }
  0x17   :  { %128 = shalt.err (!%p125_p10)
}
  0x18   :  { %s129_s6 = scalar_lea.vmem %s36_s15, 256  ;;  %p134_p12 = scmp.lt.s32.totalorder %s36_s15, %s36_s15 }
  0x19   :  { %p130_p11 = scmp.ne.s32.totalorder %s36_s15, %s129_s6  ;;  %p135_p13 = scmp.lt.s32.totalorder %s129_s6, %s129_s6 }
  0x1b   :  { %p136_p0 = por %p135_p13, %p134_p12 }
  0x1d   :  { %p137_p1 = pnand %p136_p0, %p130_p11 }
  0x1f   :  { %140 = shalt.err (!%p137_p1)
}
  0x20   :  { %38 = dma.hbm_to_vmem [thread:$0]  %s205_s1, 256, %s36_s15, [#allocation7]  }
  0x21   :  { %141 = dma.done.wait [#allocation5], 256  }
  0x22   :  { %142 = vsyncadd [#allocation5], 4294967040 }
  0x23   :  { %143 = dma.done.wait [#allocation7], 256  }
  0x24   :  { %144 = vsyncadd [#allocation7], 4294967040  ;;  %vm53_vm0 = vcmask 7168   ;;  %v147_v0 = vmov 0.0   ;;  %v56_v1 = vld [vmem:[#allocation4] sm:$0xff]  ;;  %v57_v2 = vld [vmem:[#allocation4 + $0x8] sm:$0xff] }
  0x25   :  { %54 = vst.msk [vmem:[#allocation2] sm:$0xff] %vm53_vm0, %v147_v0  ;;  %55 = vst.msk [vmem:[#allocation3] sm:$0xff] %vm53_vm0, %v147_v0  ;;  %v58_v3 = vld [vmem:[#allocation6] sm:$0xff]  ;;  %v59_v4 = vld [vmem:[#allocation6 + $0x8] sm:$0xff] }
  0x26   :  { %v61_v5 = vmul.f32 %v58_v3, %v56_v1  ;;  %v62_v6 = vmul.f32 %v59_v4, %v57_v2  ;;  %v70_v7 = vadd.f32 %v58_v3, %v56_v1  ;;  %v71_v8 = vadd.f32 %v59_v4, %v57_v2 }
  0x28   :  { %v63_v9 = vadd.f32 %v62_v6, %v61_v5  ;;  %v72_v10 = vadd.f32 %v71_v8, %v70_v7 }
  0x2a   :  { %64 = vadd.xlane.f32.xlu0 %v63_v9 }
  0x2c   :  { %v60_v11 = vld [vmem:[#allocation2] sm:$0xff]  ;;  %v69_v14 = vld [vmem:[#allocation3] sm:$0xff] }
  0x2e   :  { %73 = vadd.xlane.f32.xlu0 %v72_v10 }
  0xb7   :  { %v65_v12 = vpop.xlane.xlu0 %64 }
  0xb8   :  { %v66_v13 = vadd.f32 %v65_v12, %v60_v11 }
  0xba   :  { %68 = vst.msk [vmem:[#allocation2] sm:$0xff] %vm53_vm0, %v66_v13 }
  0xbb   :  { %v74_v15 = vpop.xlane.xlu0 %73 }
  0xbc   :  { %v75_v16 = vadd.f32 %v74_v15, %v69_v14 }
  0xbe   :  { %76 = vst.msk [vmem:[#allocation3] sm:$0xff] %vm53_vm0, %v75_v16 }
  0xc1   :  { %v80_v17 = vld [vmem:[#allocation2] sm:$0xff] }
  0xc2   :  { %81 = vst.msk [vmem:[%s206_s2] sm:$0xff] %vm53_vm0, %v80_v17 }
  0xc5   :  { %v82_v18 = vld [vmem:[#allocation3] sm:$0xff] }
  0xc6   :  { %83 = vst.msk [vmem:[%s207_s3] sm:$0xff] %vm53_vm0, %v82_v18 }
  0xc7   :  { %92 = vsyncpa [#allocation5], 1 }
  0xc8   :  { %93 = vsyncpa [#allocation7], 1 }

</bundles_post_ra>
